<compile_context>
chip_gen: v7x
topology: tpu7x:2x2x1
jax: 0.10.0
libtpu: 0.0.40
codegen_flags: <defaults>
</compile_context>

<pallas_src>
import functools

import jax
import jax.numpy as jnp
import numpy as np
from jax.experimental import pallas as pl
from jax.experimental.pallas import tpu as pltpu


def _round_up(x, m):
    return ((x + m - 1) // m) * m


def _cdiv(a, b):
    return (a + b - 1) // b


def _neg_pear_kernel(p_ref, l_ref, out_ref, *, batch, block_rows,
                     steps_per_slice, apply_mask):
    """Processes (block_rows, T) per grid step; accumulates an (8, T) partial per core slice."""
    c = pl.program_id(0)          # core-split axis ("parallel")
    i = pl.program_id(1)          # batch-reduction axis ("arbitrary")

    p = p_ref[...].astype(jnp.float32)   # (Bb, T)
    l = l_ref[...].astype(jnp.float32)   # (Bb, T)
    t = jnp.float32(p.shape[-1])         # static: T == preds.shape[1]

    # Per-row reductions (lane-axis reduce -> (Bb, 1) columns).
    sum_x = jnp.sum(p, axis=-1, keepdims=True)
    sum_y = jnp.sum(l, axis=-1, keepdims=True)
    sum_xy = jnp.sum(p * l, axis=-1, keepdims=True)

    num = t * sum_xy - sum_x * sum_y                                   # (Bb, 1)
    arg = (t * p * p - sum_x * sum_x) * (t * l * l - sum_y * sum_y)    # (Bb, T) elementwise
    contrib = num * jax.lax.rsqrt(arg)                                 # (Bb, T) == num/den

    if apply_mask:
        # Only present when B was padded.  Cheap (Bb, 1) sublane iota + broadcast
        # select; zero rows would otherwise inject NaN into the accumulator.
        global_block = c * steps_per_slice + i
        row_idx = global_block * block_rows + jax.lax.broadcasted_iota(
            jnp.int32, (block_rows, 1), 0)
        contrib = jnp.where(row_idx < batch, contrib, 0.0)

    # Collapse rows only down to an 8-sublane slab (pure VPU adds, tile-aligned
    # reshape); the final 8-way + cross-core reduce + epilogue run in the wrapper.
    partial8 = jnp.sum(
        contrib.reshape(block_rows // 8, 8, contrib.shape[-1]), axis=0)   # (8, T)

    @pl.when(i == 0)
    def _():
        out_ref[...] = partial8

    @pl.when(i > 0)
    def _():
        out_ref[...] += partial8


def neg_pear_loss(preds, labels, *, max_block_rows=8192):
    """Pallas implementation. preds/labels: (B, T). Returns (T,) float32."""
    assert preds.shape == labels.shape and preds.ndim == 2
    B, T = preds.shape

    itemsize = jnp.dtype(preds.dtype).itemsize
    sublane = max(8, 32 // itemsize)          # 8 for f32, 16 for bf16, 32 for int8/fp8

    # VMEM sizing derived from the chip (64 MiB v7x, 128 MiB v5e/v6e), leaving
    # >=16 MiB headroom for Mosaic internal scratch.  The 2-inputs x 2-pipeline-
    # buffers working set is kept within half of the scoped limit.
    try:
        vmem_cap = pltpu.get_tpu_info().vmem_capacity_bytes
    except Exception:
        vmem_cap = 64 * 1024 * 1024           # conservative (v7x) fallback
    vmem_limit = min(vmem_cap - 16 * 1024 * 1024, 96 * 1024 * 1024)
    block_budget = vmem_limit // 2

    rows_fit = (block_budget // (T * itemsize * 4)) // sublane * sublane
    Bb = max(sublane, min(max_block_rows, rows_fit, _round_up(B, sublane)))
    Bb = max(sublane, (Bb // sublane) * sublane)

    total_blocks = _cdiv(B, Bb)
    # Split the batch reduction across 2 per-core output slices when there is
    # enough work (uses both v7x TensorCores; serializes harmlessly on 1-TC chips).
    C = 2 if total_blocks >= 2 else 1
    S = _cdiv(total_blocks, C)
    B_pad = C * S * Bb

    if B_pad != B:
        pad = B_pad - B
        preds = jnp.pad(preds, ((0, pad), (0, 0)))
        labels = jnp.pad(labels, ((0, pad), (0, 0)))

    kernel = functools.partial(
        _neg_pear_kernel, batch=B, block_rows=Bb, steps_per_slice=S,
        apply_mask=(B_pad != B))

    in_map = lambda c, i, S=S: (c * S + i, 0)

    partials = pl.pallas_call(
        kernel,
        out_shape=jax.ShapeDtypeStruct((8 * C, T), jnp.float32),
        grid_spec=pltpu.PrefetchScalarGridSpec(
            num_scalar_prefetch=0,
            grid=(C, S),
            in_specs=[
                pl.BlockSpec((Bb, T), in_map),
                pl.BlockSpec((Bb, T), in_map),
            ],
            # Each core slice c owns its own resident (8, T) accumulator block.
            out_specs=pl.BlockSpec((8, T), lambda c, i: (c, 0)),
        ),
        compiler_params=pltpu.CompilerParams(
            dimension_semantics=("parallel", "arbitrary"),
            vmem_limit_bytes=vmem_limit,
        ),
        cost_estimate=pl.CostEstimate(
            flops=12 * B_pad * T,
            transcendentals=B_pad * T,
            bytes_accessed=2 * B_pad * T * itemsize + 8 * C * T * 4,
        ),
    )(preds, labels)

    # Epilogue in the wrapper: loss = mean_i (1 - num_i/den_i) = 1 - (sum_i num_i/den_i)/B
    return 1.0 - jnp.sum(partials, axis=0) / jnp.float32(B)


def neg_pear_loss_ref(preds, labels):
    """Pure-JAX reference, mirrors the PyTorch loop semantics exactly."""
    B, T = preds.shape
    loss = jnp.zeros((T,), jnp.float32)
    for i in range(B):
        p = preds[i].astype(jnp.float32)
        l = labels[i].astype(jnp.float32)
        sum_x = jnp.sum(p)
        sum_y = jnp.sum(l)
        sum_xy = jnp.sum(p * l)
        num = T * sum_xy - sum_x * sum_y
        den = jnp.sqrt((T * p * p - sum_x * sum_x) * (T * l * l - sum_y * sum_y))
        loss = loss + (1.0 - num / den)
    return loss / B


if __name__ == "__main__":
    key = jax.random.PRNGKey(0)
    # (B, T, max_block_rows) — second case exercises the padding mask,
    # third forces multiple blocks + the 2-way core-split path.
    cases = [(4, 128, 8192), (20, 256, 8192), (40, 128, 8)]
    for (B, T, mbr) in cases:
        key, kp, kl = jax.random.split(key, 3)
        preds = jax.random.normal(kp, (B, T), dtype=jnp.float32)
        labels = jax.random.normal(kl, (B, T), dtype=jnp.float32)

        out = jax.block_until_ready(neg_pear_loss(preds, labels, max_block_rows=mbr))
        ref = jax.block_until_ready(neg_pear_loss_ref(preds, labels))

        # NaNs / infs are possible (sqrt of negative, div by zero) — faithful to torch.
        assert out.shape == (T,)
        assert np.allclose(np.asarray(out), np.asarray(ref),
                           rtol=2e-3, atol=2e-3, equal_nan=True)

    print("KERNEL_OK")
</pallas_src>

<mosaic_0001>
module attributes {stable_mosaic.version = 11 : i64} {
  func.func @_neg_pear_kernel(%arg0: i32, %arg1: i32, %arg2: memref<8x128xf32, #tpu.memory_space<vmem>>, %arg3: memref<8x128xf32, #tpu.memory_space<vmem>>, %arg4: memref<8x128xf32, #tpu.memory_space<vmem>>) attributes {dimension_semantics = [#tpu.dimension_semantics<parallel>, #tpu.dimension_semantics<arbitrary>], iteration_bounds = array<i64: 1, 1>, scalar_prefetch = 0 : i64, scratch_operands = 0 : i64, tpu.core_type = #tpu.core_type<tc>, window_params = [{transform_indices = @transform_0, window_bounds = array<i64: 8, 128>}, {transform_indices = @transform_1, window_bounds = array<i64: 8, 128>}, {transform_indices = @transform_2, window_bounds = array<i64: 8, 128>}]} {
    %c0 = arith.constant 0 : index
    %c0_0 = arith.constant 0 : index
    %0 = vector.load %arg2[%c0, %c0_0] : memref<8x128xf32, #tpu.memory_space<vmem>>, vector<8x128xf32>
    %c0_1 = arith.constant 0 : index
    %c0_2 = arith.constant 0 : index
    %1 = vector.load %arg3[%c0_1, %c0_2] : memref<8x128xf32, #tpu.memory_space<vmem>>, vector<8x128xf32>
    %cst = arith.constant dense<0.000000e+00> : vector<8xf32>
    %2 = vector.multi_reduction <add>, %0, %cst [1] : vector<8x128xf32> to vector<8xf32>
    %3 = vector.shape_cast %2 : vector<8xf32> to vector<8x1xf32>
    %cst_3 = arith.constant dense<0.000000e+00> : vector<8xf32>
    %4 = vector.multi_reduction <add>, %1, %cst_3 [1] : vector<8x128xf32> to vector<8xf32>
    %5 = vector.shape_cast %4 : vector<8xf32> to vector<8x1xf32>
    %6 = arith.mulf %0, %1 : vector<8x128xf32>
    %cst_4 = arith.constant dense<0.000000e+00> : vector<8xf32>
    %7 = vector.multi_reduction <add>, %6, %cst_4 [1] : vector<8x128xf32> to vector<8xf32>
    %8 = vector.shape_cast %7 : vector<8xf32> to vector<8x1xf32>
    %cst_5 = arith.constant 1.280000e+02 : f32
    %9 = vector.broadcast %cst_5 : f32 to vector<8x1xf32>
    %10 = arith.mulf %9, %8 : vector<8x1xf32>
    %11 = arith.mulf %3, %5 : vector<8x1xf32>
    %12 = arith.subf %10, %11 : vector<8x1xf32>
    %cst_6 = arith.constant 1.280000e+02 : f32
    %13 = vector.broadcast %cst_6 : f32 to vector<8x128xf32>
    %14 = arith.mulf %13, %0 : vector<8x128xf32>
    %15 = arith.mulf %14, %0 : vector<8x128xf32>
    %16 = arith.mulf %3, %3 : vector<8x1xf32>
    %17 = vector.broadcast %16 : vector<8x1xf32> to vector<8x128xf32>
    %18 = arith.subf %15, %17 : vector<8x128xf32>
    %cst_7 = arith.constant 1.280000e+02 : f32
    %19 = vector.broadcast %cst_7 : f32 to vector<8x128xf32>
    %20 = arith.mulf %19, %1 : vector<8x128xf32>
    %21 = arith.mulf %20, %1 : vector<8x128xf32>
    %22 = arith.mulf %5, %5 : vector<8x1xf32>
    %23 = vector.broadcast %22 : vector<8x1xf32> to vector<8x128xf32>
    %24 = arith.subf %21, %23 : vector<8x128xf32>
    %25 = arith.mulf %18, %24 : vector<8x128xf32>
    %26 = math.rsqrt %25 : vector<8x128xf32>
    %27 = vector.broadcast %12 : vector<8x1xf32> to vector<8x128xf32>
    %28 = arith.mulf %27, %26 : vector<8x128xf32>
    %c1_i32 = arith.constant 1 : i32
    %29 = arith.muli %arg0, %c1_i32 : i32
    %30 = arith.addi %29, %arg1 : i32
    %c8_i32 = arith.constant 8 : i32
    %31 = arith.muli %30, %c8_i32 : i32
    %32 = tpu.iota {dimensions = array<i32: 0>} : vector<8x1xi32>
    %33 = vector.broadcast %31 : i32 to vector<8x1xi32>
    %34 = arith.addi %33, %32 : vector<8x1xi32>
    %c4_i32 = arith.constant 4 : i32
    %35 = vector.broadcast %c4_i32 : i32 to vector<8x1xi32>
    %36 = arith.cmpi slt, %34, %35 : vector<8x1xi32>
    %cst_8 = arith.constant 0.000000e+00 : f32
    %37 = vector.shape_cast %36 : vector<8x1xi1> to vector<8x1xi1>
    %38 = vector.broadcast %37 : vector<8x1xi1> to vector<8x128xi1>
    %39 = vector.broadcast %cst_8 : f32 to vector<8x128xf32>
    %40 = arith.select %38, %28, %39 : vector<8x128xi1>, vector<8x128xf32>
    %41 = vector.shape_cast %40 : vector<8x128xf32> to vector<1x8x128xf32>
    %cst_9 = arith.constant dense<0.000000e+00> : vector<8x128xf32>
    %42 = vector.multi_reduction <add>, %41, %cst_9 [0] : vector<1x8x128xf32> to vector<8x128xf32>
    %c0_i32 = arith.constant 0 : i32
    %43 = arith.cmpi eq, %arg1, %c0_i32 : i32
    %44 = arith.extui %43 : i1 to i32
    %c0_i32_10 = arith.constant 0 : i32
    %45 = arith.cmpi ne, %44, %c0_i32_10 : i32
    scf.if %45 {
      %c0_13 = arith.constant 0 : index
      %c0_14 = arith.constant 0 : index
      %49 = vector.load %arg4[%c0_13, %c0_14] : memref<8x128xf32, #tpu.memory_space<vmem>>, vector<8x128xf32>
      tpu.vector_store %arg4[%c0_13, %c0_14], %42 {strides = array<i32>} : memref<8x128xf32, #tpu.memory_space<vmem>>, vector<8x128xf32>,
    } else {
    }
    %c0_i32_11 = arith.constant 0 : i32
    %46 = arith.cmpi sgt, %arg1, %c0_i32_11 : i32
    %47 = arith.extui %46 : i1 to i32
    %c0_i32_12 = arith.constant 0 : i32
    %48 = arith.cmpi ne, %47, %c0_i32_12 : i32
    scf.if %48 {
      %c0_13 = arith.constant 0 : index
      %c0_14 = arith.constant 0 : index
      %49 = vector.load %arg4[%c0_13, %c0_14] : memref<8x128xf32, #tpu.memory_space<vmem>>, vector<8x128xf32>
      %50 = arith.addf %49, %42 : vector<8x128xf32>
      %c0_15 = arith.constant 0 : index
      %c0_16 = arith.constant 0 : index
      %51 = vector.load %arg4[%c0_15, %c0_16] : memref<8x128xf32, #tpu.memory_space<vmem>>, vector<8x128xf32>
      tpu.vector_store %arg4[%c0_15, %c0_16], %50 {strides = array<i32>} : memref<8x128xf32, #tpu.memory_space<vmem>>, vector<8x128xf32>,
    } else {
    }
    return
  }
  func.func @transform_0(%arg0: i32, %arg1: i32) -> (i32, i32) {
    %c1_i32 = arith.constant 1 : i32
    %0 = arith.muli %arg0, %c1_i32 : i32
    %1 = arith.addi %0, %arg1 : i32
    %c0_i32 = arith.constant 0 : i32
    %c0_i32_0 = arith.constant 0 : i32
    return %1, %c0_i32 : i32, i32
  }
  func.func @transform_1(%arg0: i32, %arg1: i32) -> (i32, i32) {
    %c1_i32 = arith.constant 1 : i32
    %0 = arith.muli %arg0, %c1_i32 : i32
    %1 = arith.addi %0, %arg1 : i32
    %c0_i32 = arith.constant 0 : i32
    %c0_i32_0 = arith.constant 0 : i32
    return %1, %c0_i32 : i32, i32
  }
  func.func @transform_2(%arg0: i32, %arg1: i32) -> (i32, i32) {
    %c0_i32 = arith.constant 0 : i32
    %c0_i32_0 = arith.constant 0 : i32
    return %arg0, %c0_i32 : i32, i32
  }
}

</mosaic_0001>

<bundles_post_ra>
// kernel: tpu_custom_call.1
= control target key start
LH: loop header
LB: loop body
LE: loop exit
PB: predicated region body
PF: predicated region fallthrough
CT: control target
= control target key end

     0   :  { %7 = vsyncpa [#allocation3], 0  ;;  %s237_s0 = inlined_call_operand.hbm [shape: f32[8,128], index: 0, kind: input, shape index: {}]   ;;  %s238_s1 = inlined_call_operand.hbm [shape: f32[8,128], index: 1, kind: input, shape index: {}]   ;;  %s239_s2 = inlined_call_operand.hbm [shape: f32[8,128], index: 2, kind: output, shape index: {}]  }
   0x1   :  { %8 = vsyncpa [#allocation6], 0 }
   0x2   :  { %9 = vsyncpa [#allocation4], 0  ;;  %s183_s9 = smov [#allocation2]   ;;  %s184_s11 = smov [#allocation5]  }
   0x3   :  { %s19_s10 = sshll.u32 %s183_s9, 4  ;;  %s32_s12 = sshll.u32 %s184_s11, 4  ;;  %s20_s10 = int_to_ptr.vmem [resolvable:$true] %s19_s10  ;;  %s33_s12 = int_to_ptr.vmem [resolvable:$true] %s32_s12 }
   0x4   :  { %s111_s15 = scalar_lea.hbm %s237_s0, 128 }
   0x5   :  { %p112_p0 = scmp.ne.s32.totalorder %s237_s0, %s111_s15  ;;  %p115_p1 = scmp.lt.u32.totalorder %s111_s15, %s237_s0 }
   0x7   :  { %p117_p2 = pnand %p115_p1, %p112_p0 }
   0x9   :  { %120 = shalt.err (!%p117_p2)
}
   0xa   :  { %s121_s20 = scalar_lea.vmem %s20_s10, 128  ;;  %p126_p4 = scmp.lt.s32.totalorder %s20_s10, %s20_s10 }
   0xb   :  { %p122_p3 = scmp.ne.s32.totalorder %s20_s10, %s121_s20  ;;  %p127_p5 = scmp.lt.s32.totalorder %s121_s20, %s121_s20 }
   0xd   :  { %p128_p6 = por %p127_p5, %p126_p4 }
   0xf   :  { %p129_p7 = pnand %p128_p6, %p122_p3 }
  0x11   :  { %132 = shalt.err (!%p129_p7)
}
  0x12   :  { %22 = dma.hbm_to_vmem [thread:$0]  %s237_s0, 128, %s20_s10, [#allocation3]  }
  0x13   :  { %s133_s25 = scalar_lea.hbm %s238_s1, 128 }
  0x14   :  { %p134_p8 = scmp.ne.s32.totalorder %s238_s1, %s133_s25  ;;  %p137_p9 = scmp.lt.u32.totalorder %s133_s25, %s238_s1 }
  0x16   :  { %p139_p10 = pnand %p137_p9, %p134_p8 }
  0x18   :  { %142 = shalt.err (!%p139_p10)
}
  0x19   :  { %s143_s30 = scalar_lea.vmem %s33_s12, 128  ;;  %p148_p12 = scmp.lt.s32.totalorder %s33_s12, %s33_s12 }
  0x1a   :  { %p144_p11 = scmp.ne.s32.totalorder %s33_s12, %s143_s30  ;;  %p149_p13 = scmp.lt.s32.totalorder %s143_s30, %s143_s30 }
  0x1c   :  { %p150_p0 = por %p149_p13, %p148_p12 }
  0x1e   :  { %p151_p1 = pnand %p150_p0, %p144_p11 }
  0x20   :  { %154 = shalt.err (!%p151_p1)
}
  0x21   :  { %35 = dma.hbm_to_vmem [thread:$0]  %s238_s1, 128, %s33_s12, [#allocation6]  }
  0x22   :  { %177 = dma.done.wait [#allocation3], 128  }
  0x23   :  { %178 = vsyncadd [#allocation3], 4294967168 }
  0x24   :  { %179 = dma.done.wait [#allocation6], 128  }
  0x25   :  { %180 = vsyncadd [#allocation6], 4294967168  ;;  %v44_v0 = vld [vmem:[#allocation2] sm:$0xff]  ;;  %v45_v1 = vld [vmem:[#allocation5] sm:$0xff]  ;;  %v69_v15 = vlaneseq  ;;  %s185_s1 = smov [#allocation7]  }
  0x26   :  { %46 = vadd.xlane.f32.xlu0 %v44_v0  ;;  %v50_v2 = vmul.f32 %v45_v1, %v44_v0  ;;  %v56_v3 = vmul.f32 128.0, %v44_v0  ;;  %v60_v4 = vmul.f32 128.0, %v45_v1  ;;  %s96_s4 = sshll.u32 %s185_s1, 4  ;;  %s97_s4 = int_to_ptr.vmem [resolvable:$true] %s96_s4 }
  0x27   :  { %v70_v18 = vshrl.u32 %v69_v15, 7  ;;  %s155_s5 = scalar_lea.vmem %s97_s4, 128  ;;  %p160_p3 = scmp.lt.s32.totalorder %s97_s4, %s97_s4 }
  0x28   :  { %51 = vadd.xlane.f32.xlu1 %v50_v2  ;;  %v57_v6 = vmul.f32 %v56_v3, %v44_v0  ;;  %v61_v8 = vmul.f32 %v60_v4, %v45_v1  ;;  %p156_p2 = scmp.ne.s32.totalorder %s97_s4, %s155_s5  ;;  %p161_p4 = scmp.lt.s32.totalorder %s155_s5, %s155_s5 }
  0x29   :  { %vm73_vm0 = vcmp.lt.s32.totalorder %v70_v18, 4 }
  0x2a   :  { %48 = vadd.xlane.f32.xlu0 %v45_v1  ;;  %p162_p5 = por %p161_p4, %p160_p3 }
  0x2c   :  { %p163_p6 = pnand %p162_p5, %p156_p2 }
  0xb3   :  { %v47_v5 = vpop.xlane.xlu0 %46 }
  0xb4   :  { %v58_v7 = vmul.f32 %v47_v5, %v47_v5 }
  0xb5   :  { %v52_v14 = vpop.xlane.xlu1 %51 }
  0xb6   :  { %v59_v11 = vsub.f32 %v57_v6, %v58_v7  ;;  %v53_v17 = vmul.f32 128.0, %v52_v14 }
  0xb7   :  { %v49_v9 = vpop.xlane.xlu0 %48 }
  0xb8   :  { %v62_v10 = vmul.f32 %v49_v9, %v49_v9  ;;  %v54_v16 = vmul.f32 %v49_v9, %v47_v5 }
  0xba   :  { %v63_v12 = vsub.f32 %v61_v8, %v62_v10  ;;  %v55_v19 = vsub.f32 %v53_v17, %v54_v16 }
  0xbc   :  { %v64_v13 = vmul.f32 %v63_v12, %v59_v11 }
  0xbe   :  { %109 = vrsqrt.f32 %v64_v13 }
  0xc8   :  { %v110_v20 = vpop.eup %109 }
  0xc9   :  { %v66_v21 = vmul.f32 %v110_v20, %v55_v19 }
  0xcb   :  { %v76_v22 = vsel %vm73_vm0, %v66_v21, 0.0 }
  0xcc   :  { %82 = vst [vmem:[#allocation7] sm:$0xff] %v76_v22 }
  0xcd   :  { %166 = shalt.err (!%p163_p6)
}
  0xce   :  { %s167_s8 = scalar_lea.hbm %s239_s2, 128 }
  0xcf   :  { %p168_p7 = scmp.ne.s32.totalorder %s239_s2, %s167_s8  ;;  %p171_p8 = scmp.lt.u32.totalorder %s167_s8, %s239_s2 }
  0xd1   :  { %p173_p9 = pnand %p171_p8, %p168_p7 }
  0xd3   :  { %176 = shalt.err (!%p173_p9)
}
  0xd4   :  { %99 = dma.vmem_to_hbm [thread:$0]  %s97_s4, 128, %s239_s2, [#allocation4]  }
  0xd5   :  { %181 = dma.done.wait [#allocation4], 128  }
  0xd6   :  { %182 = vsyncadd [#allocation4], 4294967168 }
  0xd7   :  { %103 = vsyncpa [#allocation3], 1 }
  0xd8   :  { %104 = vsyncpa [#allocation6], 1 }
  0xd9   :  { %105 = vsyncpa [#allocation4], 1 }

</bundles_post_ra>
